<compile_context>
chip_gen: v7x
topology: tpu7x:2x2x1
jax: 0.10.0
libtpu: 0.0.40
codegen_flags: <defaults>
</compile_context>

<pallas_src>
import functools

import jax
import jax.numpy as jnp
import numpy as np
from jax import lax
from jax.experimental import pallas as pl
from jax.experimental.pallas import tpu as pltpu

EPS = 1e-5  # nn.InstanceNorm2d default


# ---------------------------------------------------------------------------
# Fused kernel: one grid step per batch tile.
# ---------------------------------------------------------------------------
def _identify_block_kernel(x_ref, mask_ref, w1_ref, w2_ref, *rest,
                           H, W, has_bias):
    """Fused residual block for one batch tile.

    x_ref    : (B, C, H*(W+2))  input, extended (width-padded) lane layout
    mask_ref : (1, H*(W+2))     1.0 on the W valid columns per row, 0.0 on the
                                2 junk columns
    w*_ref   : (C, 9*C) bf16    conv weights, column = (kh*3+kw)*C + cin
    b*_ref   : (C, 1)  f32      conv biases (only present when has_bias)
    o_ref    : (B, C, H*(W+2))  output, same extended layout
    pad_ref  : (C, L) f32       padded-flat scratch, L = (H+3)*(W+2)
    patch_ref: (9C, H*(W+2)) bf16  im2col patches
    """
    if has_bias:
        b1_ref, b2_ref, o_ref, pad_ref, patch_ref = rest
    else:
        o_ref, pad_ref, patch_ref = rest
        b1_ref = b2_ref = None

    B, C = x_ref.shape[0], x_ref.shape[1]
    Wp = W + 2
    Hext = H * Wp
    L = pad_ref.shape[1]
    head = Wp + 1                 # first interior element of the flat buffer
    tail = (H + 1) * Wp + 1       # one past the last interior element
    inv_hw = 1.0 / float(H * W)

    mask = mask_ref[...]          # (1, Hext) f32

    # Halo-only zeroing.  The interior [head, head+Hext) is fully rewritten
    # before every conv (its in-row halo columns receive the zeros already in
    # the masked activations), so only the head (top halo row + first left
    # halo) and tail (bottom halo + slack) need explicit zeros.  Done every
    # step, NOT gated on program_id==0, so it stays correct under megacore.
    pad_ref[:, :head] = jnp.zeros((C, head), jnp.float32)
    pad_ref[:, tail:] = jnp.zeros((C, L - tail), jnp.float32)

    def conv3x3(h_ext, w_ref, b_ref):
        # h_ext: (C, Hext) f32 with zeros in its 2 junk columns per row, so a
        # single contiguous lane-offset store fills both the interior and the
        # per-row halo columns of the padded-flat buffer.
        pad_ref[:, head:head + Hext] = h_ext
        # im2col: tap (kh, kw) is the flat buffer shifted by kh*Wp + kw; the
        # row wrap-around only lands in (masked) junk output columns.
        for kh in range(3):
            for kw in range(3):
                t = kh * 3 + kw
                off = kh * Wp + kw
                patch_ref[t * C:(t + 1) * C, :] = (
                    pad_ref[:, off:off + Hext].astype(jnp.bfloat16))
        # One MXU matmul with K = 9*C (bf16 operands, f32 accumulation).
        y = jnp.dot(w_ref[...], patch_ref[...],
                    preferred_element_type=jnp.float32)           # (C, Hext)
        if b_ref is not None:
            y = y + b_ref[...]
        return y

    def norm_stats(y):
        # Single-pass masked statistics; biased variance (InstanceNorm2d).
        ym = y * mask
        s1 = jnp.sum(ym, axis=1, keepdims=True)
        s2 = jnp.sum(ym * ym, axis=1, keepdims=True)
        mean = s1 * inv_hw
        var = s2 * inv_hw - mean * mean
        return mean, lax.rsqrt(var + EPS)

    for b in range(B):                                    # unrolled batch tile
        x = x_ref[b].astype(jnp.float32)                  # (C, Hext), junk = 0
        y1 = conv3x3(x, w1_ref, b1_ref)
        m1, r1 = norm_stats(y1)
        h = jnp.maximum((y1 - m1) * r1, 0.0) * mask       # norm + ReLU + mask
        y2 = conv3x3(h, w2_ref, b2_ref)
        m2, r2 = norm_stats(y2)
        o_ref[b] = ((y2 - m2) * r2 + x).astype(o_ref.dtype)


# ---------------------------------------------------------------------------
# Wrapper (NCHW in / NCHW out, PyTorch convention).
# ---------------------------------------------------------------------------
def identify_block_forward(x_nchw, params, *, batch_tile=None):
    N, C, H, W = x_nchw.shape
    w1, w2 = params["w1"], params["w2"]  # OIHW
    assert w1.shape == (C, C, 3, 3) and w2.shape == (C, C, 3, 3), \
        "residual add requires in_channels == out_channels"

    Wp = W + 2
    Hext = H * Wp
    L = (H + 3) * Wp   # flat padded length (+slack so the last taps stay in-bounds)

    if batch_tile is None:
        # Largest tile (<=8) that still leaves >=2 grid steps (v7x megacore).
        cands = [bt for bt in range(1, min(8, N) + 1)
                 if N % bt == 0 and N // bt >= 2]
        batch_tile = max(cands) if cands else N
    assert N % batch_tile == 0
    grid = (N // batch_tile,)

    def to_2d(w):
        # (Cout, Cin, kh, kw) -> (Cout, kh, kw, Cin) -> (Cout, 9*Cin), bf16.
        # Column index = (kh*3 + kw)*Cin + cin, matching the kernel's patches.
        return jnp.transpose(w, (0, 2, 3, 1)).reshape(C, 9 * C).astype(jnp.bfloat16)

    w1_2d, w2_2d = to_2d(w1), to_2d(w2)
    b1, b2 = params.get("b1"), params.get("b2")
    has_bias = (b1 is not None) or (b2 is not None)

    # Extended (width-padded) lane layout: 2 zero junk columns per image row.
    x_ext = jnp.pad(x_nchw, ((0, 0), (0, 0), (0, 0), (0, 2))).reshape(N, C, Hext)
    mask = ((jnp.arange(Hext, dtype=jnp.int32) % Wp) < W)
    mask = mask.astype(jnp.float32).reshape(1, Hext)

    inv = dict(pipeline_mode=pl.Buffered(1))              # grid-invariant inputs
    in_specs = [
        pl.BlockSpec((batch_tile, C, Hext), lambda n: (n, 0, 0)),
        pl.BlockSpec((1, Hext), lambda n: (0, 0), **inv),
        pl.BlockSpec((C, 9 * C), lambda n: (0, 0), **inv),
        pl.BlockSpec((C, 9 * C), lambda n: (0, 0), **inv),
    ]
    inputs = [x_ext, mask, w1_2d, w2_2d]
    if has_bias:
        zb = jnp.zeros((C,), jnp.float32)
        inputs += [
            (b1 if b1 is not None else zb).reshape(C, 1).astype(jnp.float32),
            (b2 if b2 is not None else zb).reshape(C, 1).astype(jnp.float32),
        ]
        in_specs += [pl.BlockSpec((C, 1), lambda n: (0, 0), **inv)] * 2

    # Explicit VMEM sizing with headroom (matters on v7x's 64 MiB).
    est = (4 * batch_tile * C * Hext * 4     # in/out blocks, double-buffered
           + 2 * C * 9 * C * 2               # bf16 weights (single-buffered)
           + C * L * 4                       # padded-flat scratch
           + 9 * C * Hext * 2                # bf16 patches scratch
           + 12 * C * Hext * 4)              # f32 temporaries headroom
    vmem_limit = int(min(max(2 * est, 32 << 20), 100 << 20))

    # TODO(synk): for large H*W the whole-image instance norm should become a
    # row-tiled two-pass (stats, then apply) pipeline sized per-generation
    # VMEM (about half the tile on v7x); this fused version targets feature
    # maps whose per-image working set fits VMEM.
    kernel = functools.partial(_identify_block_kernel, H=H, W=W,
                               has_bias=has_bias)
    out_ext = pl.pallas_call(
        kernel,
        out_shape=jax.ShapeDtypeStruct((N, C, Hext), x_nchw.dtype),
        grid_spec=pltpu.PrefetchScalarGridSpec(
            num_scalar_prefetch=0,
            grid=grid,
            in_specs=in_specs,
            out_specs=pl.BlockSpec((batch_tile, C, Hext), lambda n: (n, 0, 0)),
            scratch_shapes=[pltpu.VMEM((C, L), jnp.float32),
                            pltpu.VMEM((9 * C, Hext), jnp.bfloat16)],
        ),
        compiler_params=pltpu.CompilerParams(
            dimension_semantics=("parallel",),
            vmem_limit_bytes=vmem_limit),
    )(*inputs)

    # Drop the 2 junk columns per row and restore NCHW.
    return out_ext.reshape(N, C, H, Wp)[:, :, :, :W]


# ---------------------------------------------------------------------------
# Parameter init + plain-JAX reference (correctness sanity check).
# ---------------------------------------------------------------------------
def init_params(key, in_channels, out_channels, bias=False):
    k1, k2, k3, k4 = jax.random.split(key, 4)

    def w_init(k, cout, cin):
        fan_in = cin * 9
        return jax.random.normal(k, (cout, cin, 3, 3), jnp.float32) / np.sqrt(fan_in)

    p = dict(w1=w_init(k1, out_channels, in_channels),
             w2=w_init(k2, out_channels, out_channels),
             b1=None, b2=None)
    if bias:
        p["b1"] = jax.random.normal(k3, (out_channels,), jnp.float32) * 0.01
        p["b2"] = jax.random.normal(k4, (out_channels,), jnp.float32) * 0.01
    return p


def reference_forward(x, params):
    def conv(h, w_oihw, b):
        y = lax.conv_general_dilated(
            h, w_oihw, (1, 1), ((1, 1), (1, 1)),
            dimension_numbers=("NCHW", "OIHW", "NCHW"))
        if b is not None:
            y = y + b[None, :, None, None]
        return y

    def inorm(h):
        m = jnp.mean(h, axis=(2, 3), keepdims=True)
        v = jnp.mean((h - m) ** 2, axis=(2, 3), keepdims=True)
        return (h - m) * lax.rsqrt(v + EPS)

    h = jax.nn.relu(inorm(conv(x, params["w1"], params.get("b1"))))
    y = inorm(conv(h, params["w2"], params.get("b2")))
    return y + x


if __name__ == "__main__":
    key = jax.random.PRNGKey(0)
    k_x, k_p = jax.random.split(key)

    batch, channels, H, W = 2, 8, 16, 16
    x_in = jax.random.normal(k_x, (batch, channels, H, W), jnp.float32)
    params = init_params(k_p, channels, channels, bias=False)

    out = jax.block_until_ready(identify_block_forward(x_in, params))
    ref = jax.block_until_ready(reference_forward(x_in, params))

    assert out.shape == (batch, channels, H, W)
    err = float(np.max(np.abs(np.asarray(out) - np.asarray(ref))))
    assert np.allclose(np.asarray(out), np.asarray(ref),
                       atol=5e-2, rtol=5e-2), f"max abs err = {err}"

    print("KERNEL_OK")
</pallas_src>

<mosaic_0001>
module attributes {stable_mosaic.version = 11 : i64} {
  func.func @_identify_block_kernel(%arg0: i32, %arg1: memref<1x8x288xf32, #tpu.memory_space<vmem>>, %arg2: memref<1x288xf32, #tpu.memory_space<vmem>>, %arg3: memref<8x72xbf16, #tpu.memory_space<vmem>>, %arg4: memref<8x72xbf16, #tpu.memory_space<vmem>>, %arg5: memref<1x8x288xf32, #tpu.memory_space<vmem>>, %arg6: memref<8x342xf32, #tpu.memory_space<vmem>>, %arg7: memref<72x288xbf16, #tpu.memory_space<vmem>>) attributes {dimension_semantics = [#tpu.dimension_semantics<parallel>], iteration_bounds = array<i64: 2>, scalar_prefetch = 0 : i64, scratch_operands = 2 : i64, tpu.core_type = #tpu.core_type<tc>, window_params = [{transform_indices = @transform_0, window_bounds = array<i64: 1, 8, 288>}, {pipeline_mode = #tpu.pipeline_mode<synchronous>, transform_indices = @transform_1, window_bounds = array<i64: 1, 288>}, {pipeline_mode = #tpu.pipeline_mode<synchronous>, transform_indices = @transform_2, window_bounds = array<i64: 8, 72>}, {pipeline_mode = #tpu.pipeline_mode<synchronous>, transform_indices = @transform_3, window_bounds = array<i64: 8, 72>}, {transform_indices = @transform_4, window_bounds = array<i64: 1, 8, 288>}]} {
    %c0 = arith.constant 0 : index
    %c0_0 = arith.constant 0 : index
    %0 = vector.load %arg2[%c0, %c0_0] : memref<1x288xf32, #tpu.memory_space<vmem>>, vector<1x288xf32>
    %cst = arith.constant 0.000000e+00 : f32
    %1 = vector.broadcast %cst : f32 to vector<8x19xf32>
    %c0_1 = arith.constant 0 : index
    %c0_2 = arith.constant 0 : index
    %2 = vector.load %arg6[%c0_1, %c0_2] : memref<8x342xf32, #tpu.memory_space<vmem>>, vector<8x19xf32>
    tpu.vector_store %arg6[%c0_1, %c0_2], %1 {strides = array<i32>} : memref<8x342xf32, #tpu.memory_space<vmem>>, vector<8x19xf32>,
    %cst_3 = arith.constant 0.000000e+00 : f32
    %3 = vector.broadcast %cst_3 : f32 to vector<8x35xf32>
    %c0_4 = arith.constant 0 : index
    %c307 = arith.constant 307 : index
    %4 = vector.load %arg6[%c0_4, %c307] : memref<8x342xf32, #tpu.memory_space<vmem>>, vector<8x35xf32>
    tpu.vector_store %arg6[%c0_4, %c307], %3 {strides = array<i32>} : memref<8x342xf32, #tpu.memory_space<vmem>>, vector<8x35xf32>,
    %c0_5 = arith.constant 0 : index
    %c0_6 = arith.constant 0 : index
    %c0_7 = arith.constant 0 : index
    %5 = vector.load %arg1[%c0_5, %c0_6, %c0_7] : memref<1x8x288xf32, #tpu.memory_space<vmem>>, vector<1x8x288xf32>
    %6 = vector.shape_cast %5 : vector<1x8x288xf32> to vector<8x288xf32>
    %c0_8 = arith.constant 0 : index
    %c19 = arith.constant 19 : index
    %7 = vector.load %arg6[%c0_8, %c19] : memref<8x342xf32, #tpu.memory_space<vmem>>, vector<8x288xf32>
    tpu.vector_store %arg6[%c0_8, %c19], %6 {strides = array<i32>} : memref<8x342xf32, #tpu.memory_space<vmem>>, vector<8x288xf32>,
    %c0_9 = arith.constant 0 : index
    %c0_10 = arith.constant 0 : index
    %8 = vector.load %arg6[%c0_9, %c0_10] : memref<8x342xf32, #tpu.memory_space<vmem>>, vector<8x288xf32>
    %9 = arith.truncf %8 : vector<8x288xf32> to vector<8x288xbf16>
    %c0_11 = arith.constant 0 : index
    %c0_12 = arith.constant 0 : index
    %10 = vector.load %arg7[%c0_11, %c0_12] : memref<72x288xbf16, #tpu.memory_space<vmem>>, vector<8x288xbf16>
    tpu.vector_store %arg7[%c0_11, %c0_12], %9 {strides = array<i32>} : memref<72x288xbf16, #tpu.memory_space<vmem>>, vector<8x288xbf16>,
    %c0_13 = arith.constant 0 : index
    %c1 = arith.constant 1 : index
    %11 = vector.load %arg6[%c0_13, %c1] : memref<8x342xf32, #tpu.memory_space<vmem>>, vector<8x288xf32>
    %12 = arith.truncf %11 : vector<8x288xf32> to vector<8x288xbf16>
    %c8 = arith.constant 8 : index
    %c0_14 = arith.constant 0 : index
    %13 = vector.load %arg7[%c8, %c0_14] : memref<72x288xbf16, #tpu.memory_space<vmem>>, vector<8x288xbf16>
    tpu.vector_store %arg7[%c8, %c0_14], %12 {strides = array<i32>} : memref<72x288xbf16, #tpu.memory_space<vmem>>, vector<8x288xbf16>,
    %c0_15 = arith.constant 0 : index
    %c2 = arith.constant 2 : index
    %14 = vector.load %arg6[%c0_15, %c2] : memref<8x342xf32, #tpu.memory_space<vmem>>, vector<8x288xf32>
    %15 = arith.truncf %14 : vector<8x288xf32> to vector<8x288xbf16>
    %c16 = arith.constant 16 : index
    %c0_16 = arith.constant 0 : index
    %16 = vector.load %arg7[%c16, %c0_16] : memref<72x288xbf16, #tpu.memory_space<vmem>>, vector<8x288xbf16>
    tpu.vector_store %arg7[%c16, %c0_16], %15 {strides = array<i32>} : memref<72x288xbf16, #tpu.memory_space<vmem>>, vector<8x288xbf16>,
    %c0_17 = arith.constant 0 : index
    %c18 = arith.constant 18 : index
    %17 = vector.load %arg6[%c0_17, %c18] : memref<8x342xf32, #tpu.memory_space<vmem>>, vector<8x288xf32>
    %18 = arith.truncf %17 : vector<8x288xf32> to vector<8x288xbf16>
    %c24 = arith.constant 24 : index
    %c0_18 = arith.constant 0 : index
    %19 = vector.load %arg7[%c24, %c0_18] : memref<72x288xbf16, #tpu.memory_space<vmem>>, vector<8x288xbf16>
    tpu.vector_store %arg7[%c24, %c0_18], %18 {strides = array<i32>} : memref<72x288xbf16, #tpu.memory_space<vmem>>, vector<8x288xbf16>,
    %c0_19 = arith.constant 0 : index
    %c19_20 = arith.constant 19 : index
    %20 = vector.load %arg6[%c0_19, %c19_20] : memref<8x342xf32, #tpu.memory_space<vmem>>, vector<8x288xf32>
    %21 = arith.truncf %20 : vector<8x288xf32> to vector<8x288xbf16>
    %c32 = arith.constant 32 : index
    %c0_21 = arith.constant 0 : index
    %22 = vector.load %arg7[%c32, %c0_21] : memref<72x288xbf16, #tpu.memory_space<vmem>>, vector<8x288xbf16>
    tpu.vector_store %arg7[%c32, %c0_21], %21 {strides = array<i32>} : memref<72x288xbf16, #tpu.memory_space<vmem>>, vector<8x288xbf16>,
    %c0_22 = arith.constant 0 : index
    %c20 = arith.constant 20 : index
    %23 = vector.load %arg6[%c0_22, %c20] : memref<8x342xf32, #tpu.memory_space<vmem>>, vector<8x288xf32>
    %24 = arith.truncf %23 : vector<8x288xf32> to vector<8x288xbf16>
    %c40 = arith.constant 40 : index
    %c0_23 = arith.constant 0 : index
    %25 = vector.load %arg7[%c40, %c0_23] : memref<72x288xbf16, #tpu.memory_space<vmem>>, vector<8x288xbf16>
    tpu.vector_store %arg7[%c40, %c0_23], %24 {strides = array<i32>} : memref<72x288xbf16, #tpu.memory_space<vmem>>, vector<8x288xbf16>,
    %c0_24 = arith.constant 0 : index
    %c36 = arith.constant 36 : index
    %26 = vector.load %arg6[%c0_24, %c36] : memref<8x342xf32, #tpu.memory_space<vmem>>, vector<8x288xf32>
    %27 = arith.truncf %26 : vector<8x288xf32> to vector<8x288xbf16>
    %c48 = arith.constant 48 : index
    %c0_25 = arith.constant 0 : index
    %28 = vector.load %arg7[%c48, %c0_25] : memref<72x288xbf16, #tpu.memory_space<vmem>>, vector<8x288xbf16>
    tpu.vector_store %arg7[%c48, %c0_25], %27 {strides = array<i32>} : memref<72x288xbf16, #tpu.memory_space<vmem>>, vector<8x288xbf16>,
    %c0_26 = arith.constant 0 : index
    %c37 = arith.constant 37 : index
    %29 = vector.load %arg6[%c0_26, %c37] : memref<8x342xf32, #tpu.memory_space<vmem>>, vector<8x288xf32>
    %30 = arith.truncf %29 : vector<8x288xf32> to vector<8x288xbf16>
    %c56 = arith.constant 56 : index
    %c0_27 = arith.constant 0 : index
    %31 = vector.load %arg7[%c56, %c0_27] : memref<72x288xbf16, #tpu.memory_space<vmem>>, vector<8x288xbf16>
    tpu.vector_store %arg7[%c56, %c0_27], %30 {strides = array<i32>} : memref<72x288xbf16, #tpu.memory_space<vmem>>, vector<8x288xbf16>,
    %c0_28 = arith.constant 0 : index
    %c38 = arith.constant 38 : index
    %32 = vector.load %arg6[%c0_28, %c38] : memref<8x342xf32, #tpu.memory_space<vmem>>, vector<8x288xf32>
    %33 = arith.truncf %32 : vector<8x288xf32> to vector<8x288xbf16>
    %c64 = arith.constant 64 : index
    %c0_29 = arith.constant 0 : index
    %34 = vector.load %arg7[%c64, %c0_29] : memref<72x288xbf16, #tpu.memory_space<vmem>>, vector<8x288xbf16>
    tpu.vector_store %arg7[%c64, %c0_29], %33 {strides = array<i32>} : memref<72x288xbf16, #tpu.memory_space<vmem>>, vector<8x288xbf16>,
    %c0_30 = arith.constant 0 : index
    %c0_31 = arith.constant 0 : index
    %35 = vector.load %arg3[%c0_30, %c0_31] : memref<8x72xbf16, #tpu.memory_space<vmem>>, vector<8x72xbf16>
    %c0_32 = arith.constant 0 : index
    %c0_33 = arith.constant 0 : index
    %36 = vector.load %arg7[%c0_32, %c0_33] : memref<72x288xbf16, #tpu.memory_space<vmem>>, vector<72x288xbf16>
    %cst_34 = arith.constant dense<0.000000e+00> : vector<8x288xf32>
    %37 = tpu.matmul %35, %36, %cst_34 {dimension_numbers = #tpu.dot_dimension_numbers<[1], [0], [0], [1], [0, 0, 1, 1], [], []>} : vector<8x72xbf16>, vector<72x288xbf16>, vector<8x288xf32> -> vector<8x288xf32>
    %38 = vector.broadcast %0 : vector<1x288xf32> to vector<8x288xf32>
    %39 = arith.mulf %37, %38 : vector<8x288xf32>
    %cst_35 = arith.constant dense<0.000000e+00> : vector<8xf32>
    %40 = vector.multi_reduction <add>, %39, %cst_35 [1] : vector<8x288xf32> to vector<8xf32>
    %41 = vector.shape_cast %40 : vector<8xf32> to vector<8x1xf32>
    %42 = arith.mulf %39, %39 : vector<8x288xf32>
    %cst_36 = arith.constant dense<0.000000e+00> : vector<8xf32>
    %43 = vector.multi_reduction <add>, %42, %cst_36 [1] : vector<8x288xf32> to vector<8xf32>
    %44 = vector.shape_cast %43 : vector<8xf32> to vector<8x1xf32>
    %cst_37 = arith.constant 3.906250e-03 : f32
    %45 = vector.broadcast %cst_37 : f32 to vector<8x1xf32>
    %46 = arith.mulf %41, %45 : vector<8x1xf32>
    %cst_38 = arith.constant 3.906250e-03 : f32
    %47 = vector.broadcast %cst_38 : f32 to vector<8x1xf32>
    %48 = arith.mulf %44, %47 : vector<8x1xf32>
    %49 = arith.mulf %46, %46 : vector<8x1xf32>
    %50 = arith.subf %48, %49 : vector<8x1xf32>
    %cst_39 = arith.constant 9.99999974E-6 : f32
    %51 = vector.broadcast %cst_39 : f32 to vector<8x1xf32>
    %52 = arith.addf %50, %51 : vector<8x1xf32>
    %53 = math.rsqrt %52 : vector<8x1xf32>
    %54 = vector.broadcast %46 : vector<8x1xf32> to vector<8x288xf32>
    %55 = arith.subf %37, %54 : vector<8x288xf32>
    %56 = vector.broadcast %53 : vector<8x1xf32> to vector<8x288xf32>
    %57 = arith.mulf %55, %56 : vector<8x288xf32>
    %cst_40 = arith.constant 0.000000e+00 : f32
    %58 = vector.broadcast %cst_40 : f32 to vector<8x288xf32>
    %59 = arith.maximumf %57, %58 : vector<8x288xf32>
    %60 = vector.broadcast %0 : vector<1x288xf32> to vector<8x288xf32>
    %61 = arith.mulf %59, %60 : vector<8x288xf32>
    %c0_41 = arith.constant 0 : index
    %c19_42 = arith.constant 19 : index
    %62 = vector.load %arg6[%c0_41, %c19_42] : memref<8x342xf32, #tpu.memory_space<vmem>>, vector<8x288xf32>
    tpu.vector_store %arg6[%c0_41, %c19_42], %61 {strides = array<i32>} : memref<8x342xf32, #tpu.memory_space<vmem>>, vector<8x288xf32>,
    %c0_43 = arith.constant 0 : index
    %c0_44 = arith.constant 0 : index
    %63 = vector.load %arg6[%c0_43, %c0_44] : memref<8x342xf32, #tpu.memory_space<vmem>>, vector<8x288xf32>
    %64 = arith.truncf %63 : vector<8x288xf32> to vector<8x288xbf16>
    %c0_45 = arith.constant 0 : index
    %c0_46 = arith.constant 0 : index
    %65 = vector.load %arg7[%c0_45, %c0_46] : memref<72x288xbf16, #tpu.memory_space<vmem>>, vector<8x288xbf16>
    tpu.vector_store %arg7[%c0_45, %c0_46], %64 {strides = array<i32>} : memref<72x288xbf16, #tpu.memory_space<vmem>>, vector<8x288xbf16>,
    %c0_47 = arith.constant 0 : index
    %c1_48 = arith.constant 1 : index
    %66 = vector.load %arg6[%c0_47, %c1_48] : memref<8x342xf32, #tpu.memory_space<vmem>>, vector<8x288xf32>
    %67 = arith.truncf %66 : vector<8x288xf32> to vector<8x288xbf16>
    %c8_49 = arith.constant 8 : index
    %c0_50 = arith.constant 0 : index
    %68 = vector.load %arg7[%c8_49, %c0_50] : memref<72x288xbf16, #tpu.memory_space<vmem>>, vector<8x288xbf16>
    tpu.vector_store %arg7[%c8_49, %c0_50], %67 {strides = array<i32>} : memref<72x288xbf16, #tpu.memory_space<vmem>>, vector<8x288xbf16>,
    %c0_51 = arith.constant 0 : index
    %c2_52 = arith.constant 2 : index
    %69 = vector.load %arg6[%c0_51, %c2_52] : memref<8x342xf32, #tpu.memory_space<vmem>>, vector<8x288xf32>
    %70 = arith.truncf %69 : vector<8x288xf32> to vector<8x288xbf16>
    %c16_53 = arith.constant 16 : index
    %c0_54 = arith.constant 0 : index
    %71 = vector.load %arg7[%c16_53, %c0_54] : memref<72x288xbf16, #tpu.memory_space<vmem>>, vector<8x288xbf16>
    tpu.vector_store %arg7[%c16_53, %c0_54], %70 {strides = array<i32>} : memref<72x288xbf16, #tpu.memory_space<vmem>>, vector<8x288xbf16>,
    %c0_55 = arith.constant 0 : index
    %c18_56 = arith.constant 18 : index
    %72 = vector.load %arg6[%c0_55, %c18_56] : memref<8x342xf32, #tpu.memory_space<vmem>>, vector<8x288xf32>
    %73 = arith.truncf %72 : vector<8x288xf32> to vector<8x288xbf16>
    %c24_57 = arith.constant 24 : index
    %c0_58 = arith.constant 0 : index
    %74 = vector.load %arg7[%c24_57, %c0_58] : memref<72x288xbf16, #tpu.memory_space<vmem>>, vector<8x288xbf16>
    tpu.vector_store %arg7[%c24_57, %c0_58], %73 {strides = array<i32>} : memref<72x288xbf16, #tpu.memory_space<vmem>>, vector<8x288xbf16>,
    %c0_59 = arith.constant 0 : index
    %c19_60 = arith.constant 19 : index
    %75 = vector.load %arg6[%c0_59, %c19_60] : memref<8x342xf32, #tpu.memory_space<vmem>>, vector<8x288xf32>
    %76 = arith.truncf %75 : vector<8x288xf32> to vector<8x288xbf16>
    %c32_61 = arith.constant 32 : index
    %c0_62 = arith.constant 0 : index
    %77 = vector.load %arg7[%c32_61, %c0_62] : memref<72x288xbf16, #tpu.memory_space<vmem>>, vector<8x288xbf16>
    tpu.vector_store %arg7[%c32_61, %c0_62], %76 {strides = array<i32>} : memref<72x288xbf16, #tpu.memory_space<vmem>>, vector<8x288xbf16>,
    %c0_63 = arith.constant 0 : index
    %c20_64 = arith.constant 20 : index
    %78 = vector.load %arg6[%c0_63, %c20_64] : memref<8x342xf32, #tpu.memory_space<vmem>>, vector<8x288xf32>
    %79 = arith.truncf %78 : vector<8x288xf32> to vector<8x288xbf16>
    %c40_65 = arith.constant 40 : index
    %c0_66 = arith.constant 0 : index
    %80 = vector.load %arg7[%c40_65, %c0_66] : memref<72x288xbf16, #tpu.memory_space<vmem>>, vector<8x288xbf16>
    tpu.vector_store %arg7[%c40_65, %c0_66], %79 {strides = array<i32>} : memref<72x288xbf16, #tpu.memory_space<vmem>>, vector<8x288xbf16>,
    %c0_67 = arith.constant 0 : index
    %c36_68 = arith.constant 36 : index
    %81 = vector.load %arg6[%c0_67, %c36_68] : memref<8x342xf32, #tpu.memory_space<vmem>>, vector<8x288xf32>
    %82 = arith.truncf %81 : vector<8x288xf32> to vector<8x288xbf16>
    %c48_69 = arith.constant 48 : index
    %c0_70 = arith.constant 0 : index
    %83 = vector.load %arg7[%c48_69, %c0_70] : memref<72x288xbf16, #tpu.memory_space<vmem>>, vector<8x288xbf16>
    tpu.vector_store %arg7[%c48_69, %c0_70], %82 {strides = array<i32>} : memref<72x288xbf16, #tpu.memory_space<vmem>>, vector<8x288xbf16>,
    %c0_71 = arith.constant 0 : index
    %c37_72 = arith.constant 37 : index
    %84 = vector.load %arg6[%c0_71, %c37_72] : memref<8x342xf32, #tpu.memory_space<vmem>>, vector<8x288xf32>
    %85 = arith.truncf %84 : vector<8x288xf32> to vector<8x288xbf16>
    %c56_73 = arith.constant 56 : index
    %c0_74 = arith.constant 0 : index
    %86 = vector.load %arg7[%c56_73, %c0_74] : memref<72x288xbf16, #tpu.memory_space<vmem>>, vector<8x288xbf16>
    tpu.vector_store %arg7[%c56_73, %c0_74], %85 {strides = array<i32>} : memref<72x288xbf16, #tpu.memory_space<vmem>>, vector<8x288xbf16>,
    %c0_75 = arith.constant 0 : index
    %c38_76 = arith.constant 38 : index
    %87 = vector.load %arg6[%c0_75, %c38_76] : memref<8x342xf32, #tpu.memory_space<vmem>>, vector<8x288xf32>
    %88 = arith.truncf %87 : vector<8x288xf32> to vector<8x288xbf16>
    %c64_77 = arith.constant 64 : index
    %c0_78 = arith.constant 0 : index
    %89 = vector.load %arg7[%c64_77, %c0_78] : memref<72x288xbf16, #tpu.memory_space<vmem>>, vector<8x288xbf16>
    tpu.vector_store %arg7[%c64_77, %c0_78], %88 {strides = array<i32>} : memref<72x288xbf16, #tpu.memory_space<vmem>>, vector<8x288xbf16>,
    %c0_79 = arith.constant 0 : index
    %c0_80 = arith.constant 0 : index
    %90 = vector.load %arg4[%c0_79, %c0_80] : memref<8x72xbf16, #tpu.memory_space<vmem>>, vector<8x72xbf16>
    %c0_81 = arith.constant 0 : index
    %c0_82 = arith.constant 0 : index
    %91 = vector.load %arg7[%c0_81, %c0_82] : memref<72x288xbf16, #tpu.memory_space<vmem>>, vector<72x288xbf16>
    %cst_83 = arith.constant dense<0.000000e+00> : vector<8x288xf32>
    %92 = tpu.matmul %90, %91, %cst_83 {dimension_numbers = #tpu.dot_dimension_numbers<[1], [0], [0], [1], [0, 0, 1, 1], [], []>} : vector<8x72xbf16>, vector<72x288xbf16>, vector<8x288xf32> -> vector<8x288xf32>
    %93 = vector.broadcast %0 : vector<1x288xf32> to vector<8x288xf32>
    %94 = arith.mulf %92, %93 : vector<8x288xf32>
    %cst_84 = arith.constant dense<0.000000e+00> : vector<8xf32>
    %95 = vector.multi_reduction <add>, %94, %cst_84 [1] : vector<8x288xf32> to vector<8xf32>
    %96 = vector.shape_cast %95 : vector<8xf32> to vector<8x1xf32>
    %97 = arith.mulf %94, %94 : vector<8x288xf32>
    %cst_85 = arith.constant dense<0.000000e+00> : vector<8xf32>
    %98 = vector.multi_reduction <add>, %97, %cst_85 [1] : vector<8x288xf32> to vector<8xf32>
    %99 = vector.shape_cast %98 : vector<8xf32> to vector<8x1xf32>
    %cst_86 = arith.constant 3.906250e-03 : f32
    %100 = vector.broadcast %cst_86 : f32 to vector<8x1xf32>
    %101 = arith.mulf %96, %100 : vector<8x1xf32>
    %cst_87 = arith.constant 3.906250e-03 : f32
    %102 = vector.broadcast %cst_87 : f32 to vector<8x1xf32>
    %103 = arith.mulf %99, %102 : vector<8x1xf32>
    %104 = arith.mulf %101, %101 : vector<8x1xf32>
    %105 = arith.subf %103, %104 : vector<8x1xf32>
    %cst_88 = arith.constant 9.99999974E-6 : f32
    %106 = vector.broadcast %cst_88 : f32 to vector<8x1xf32>
    %107 = arith.addf %105, %106 : vector<8x1xf32>
    %108 = math.rsqrt %107 : vector<8x1xf32>
    %109 = vector.broadcast %101 : vector<8x1xf32> to vector<8x288xf32>
    %110 = arith.subf %92, %109 : vector<8x288xf32>
    %111 = vector.broadcast %108 : vector<8x1xf32> to vector<8x288xf32>
    %112 = arith.mulf %110, %111 : vector<8x288xf32>
    %113 = arith.addf %112, %6 : vector<8x288xf32>
    %c0_89 = arith.constant 0 : index
    %c0_90 = arith.constant 0 : index
    %c0_91 = arith.constant 0 : index
    %114 = vector.load %arg5[%c0_89, %c0_90, %c0_91] : memref<1x8x288xf32, #tpu.memory_space<vmem>>, vector<1x8x288xf32>
    %115 = vector.shape_cast %114 : vector<1x8x288xf32> to vector<8x288xf32>
    %116 = vector.shape_cast %113 : vector<8x288xf32> to vector<1x8x288xf32>
    tpu.vector_store %arg5[%c0_89, %c0_90, %c0_91], %116 {strides = array<i32>} : memref<1x8x288xf32, #tpu.memory_space<vmem>>, vector<1x8x288xf32>,
    return
  }
  func.func @transform_0(%arg0: i32) -> (i32, i32, i32) {
    %c0_i32 = arith.constant 0 : i32
    %c0_i32_0 = arith.constant 0 : i32
    %c0_i32_1 = arith.constant 0 : i32
    return %arg0, %c0_i32, %c0_i32_0 : i32, i32, i32
  }
  func.func @transform_1(%arg0: i32) -> (i32, i32) {
    %c0_i32 = arith.constant 0 : i32
    %c0_i32_0 = arith.constant 0 : i32
    %c0_i32_1 = arith.constant 0 : i32
    return %c0_i32, %c0_i32_0 : i32, i32
  }
  func.func @transform_2(%arg0: i32) -> (i32, i32) {
    %c0_i32 = arith.constant 0 : i32
    %c0_i32_0 = arith.constant 0 : i32
    %c0_i32_1 = arith.constant 0 : i32
    return %c0_i32, %c0_i32_0 : i32, i32
  }
  func.func @transform_3(%arg0: i32) -> (i32, i32) {
    %c0_i32 = arith.constant 0 : i32
    %c0_i32_0 = arith.constant 0 : i32
    %c0_i32_1 = arith.constant 0 : i32
    return %c0_i32, %c0_i32_0 : i32, i32
  }
  func.func @transform_4(%arg0: i32) -> (i32, i32, i32) {
    %c0_i32 = arith.constant 0 : i32
    %c0_i32_0 = arith.constant 0 : i32
    %c0_i32_1 = arith.constant 0 : i32
    return %arg0, %c0_i32, %c0_i32_0 : i32, i32, i32
  }
}

</mosaic_0001>

<bundles_post_ra>
// kernel: tpu_custom_call.1
= control target key start
LH: loop header
LB: loop body
LE: loop exit
PB: predicated region body
PF: predicated region fallthrough
CT: control target
= control target key end

     0   :  { %9 = vsyncpa [#allocation5], 0  ;;  %s1955_s0 = inlined_call_operand.hbm [shape: f32[2,8,288], index: 0, kind: input, shape index: {}]   ;;  %s1956_s1 = inlined_call_operand.vmem [shape: f32[1,288], index: 1, kind: input, shape index: {}]   ;;  %s1957_s2 = inlined_call_operand.vmem [shape: bf16[8,72], index: 2, kind: input, shape index: {}]   ;;  %s1958_s3 = inlined_call_operand.vmem [shape: bf16[8,72], index: 3, kind: input, shape index: {}]   ;;  %s1959_s4 = inlined_call_operand.hbm [shape: f32[2,8,288], index: 4, kind: output, shape index: {}]  }
   0x1   :  { %11 = vsyncpa [#allocation5 + $0x1], 0 }
   0x2   :  { %12 = vsyncpa [#allocation6], 0 }
   0x3   :  { %14 = vsyncpa [#allocation6 + $0x1], 0  ;;  %s1630_s15 = smov 0   ;;  %s1632_s16 = smov 0  }
   0x4   :  { %s1634_s17 = smov 0   ;;  %s1636_s18 = smov 0  }
   0x5 LB: > { %s1651_s19 = sadd.s32 4294967295, %s1589_s18   ;;  %s1261_s20 = sadd.s32 4294967294, %s1589_s18   ;;  %s1589_s18 = sphi %s1636_s18, %s1973_s18   ;;  %s1585_s17 = sphi %s1634_s17, %s1972_s17   ;;  %s1581_s16 = sphi %s1632_s16, %s1971_s16   ;;  %s1577_s15 = sphi %s1630_s15, %s1970_s15  }
   0x6   : > { %s1655_s21 = sadd.s32 1, %s1589_s18   ;;  %s27_s22 = sadd.s32 1, %s1585_s17 }
   0x7   : > { %s24_s23 = ssub.s32 %s1589_s18, %s1655_s21  ;;  %p34_p0 = scmp.ne.s32.totalorder %s1585_s17, %s1581_s16 }
   0x8   : > { %p25_p1 = scmp.eq.s32.totalorder %s24_s23, 0  ;;  %p35_p2 = scmp.eq.s32.totalorder %s1589_s18, 0 }
   0x9   : > { %p40_p3 = scmp.ne.s32.totalorder %s1581_s16, %s1577_s15  ;;  %p41_p4 = scmp.eq.s32.totalorder %s1651_s19, 0 }
   0xa   : > { %s1667_s24 = scalar_select %p25_p1, %s1585_s17, %s27_s22  }
   0xb   : > { %p36_p5 = por %p35_p2, %p34_p0  ;;  %p1669_p6 = por %p41_p4, %p40_p3 }
   0xc   : > { %p127_p7 = scmp.eq.s32.totalorder %s1651_s19, 1  ;;  %p133_p8 = scmp.eq.s32.totalorder %s1261_s20, 1 }
   0xd   : > { %p1433_p10 = scmp.lt.s32.totalorder %s1589_s18, 2  ;;  %s162_s28 = sand.u32 1, %s1585_s17  }
   0xe   : > { %p1676_p11 = por %p127_p7, %p34_p0  ;;  %p1680_p12 = por %p133_p8, %p40_p3 }
   0xf   : > { %s1418_s29 = smul.u32 384, %s1589_s18  ;;  %p1691_p13 = pnand %p1433_p10, %p36_p5 }
  0x10   : > { %s1962_s26 = scalar_select %p1676_p11, 1, 0 }
  0x11   : > { %s1963_s27 = scalar_select %p1680_p12, 1, 0 }
  0x12   : > { %s1417_s30 = smul.u32 24, %s162_s28  ;;  %s1689_s7 = scalar_lea.hbm %s1955_s0, %s1418_s29 }
  0x13   : > { %s163_s11 = scalar_lea.sflag [#allocation5], %s162_s28  ;;  %s1493_s12 = scalar_lea.hbm %s1689_s7, 384 }
  0x14   : > { %s166_s9 = scalar_lea.vmem [#allocation4], %s1417_s30  ;;  %p1494_p2 = scmp.ne.s32.totalorder %s1689_s7, %s1493_s12 }
  0x15   : > { %s174_s10 = sshll.u32 %s166_s9, 4  ;;  %p1495_p3 = pneg %p1691_p13  ;;  %s1696_s10 = int_to_ptr.vmem [resolvable:$true] %s174_s10 }
  0x16   : > { %s1498_s20 = scalar_lea.hbm %s1955_s0, 768  ;;  %p1499_p7 = scmp.lt.u32.totalorder %s1689_s7, %s1955_s0 }
  0x17   : > { %p1496_p4 = pnand %p1495_p3, %p1494_p2  ;;  %p1500_p8 = scmp.lt.u32.totalorder %s1498_s20, %s1493_s12 }
  0x18   : > { %p1502_p9 = scmp.lt.u32.totalorder %s1493_s12, %s1689_s7 }
  0x19   : > { %p1497_p5 = pneg %p1496_p4  ;;  %p1501_p10 = por %p1500_p8, %p1499_p7 }
  0x1b   : > { %p1503_p0 = por %p1502_p9, %p1501_p10 }
  0x1d   : > { %p1504_p1 = pnand %p1503_p0, %p1497_p5 }
  0x1f   : > { %1507 = shalt.err (!%p1504_p1)
}
  0x20   : > { %s1508_s28 = scalar_lea.vmem %s1696_s10, 384  ;;  %s1591_s29 = smov [#allocation4]  }
  0x21   : > { %p1509_p2 = scmp.ne.s32.totalorder %s1696_s10, %s1508_s28  ;;  %s1513_s30 = sshll.u32 %s1591_s29, 4  ;;  %s1514_s30 = int_to_ptr.vmem [resolvable:$false] %s1513_s30 }
  0x22   : > { %s1515_s5 = scalar_lea.vmem %s1514_s30, 768  ;;  %p1516_p11 = scmp.lt.s32.totalorder %s1696_s10, %s1514_s30 }
  0x23   : > { %p1511_p4 = pnand %p1509_p2, %p1495_p3  ;;  %p1517_p7 = scmp.lt.s32.totalorder %s1515_s5, %s1508_s28 }
  0x25   : > { %p1512_p12 = pneg %p1511_p4  ;;  %p1518_p8 = por %p1517_p7, %p1516_p11 }
  0x27   : > { %p1519_p9 = pnand %p1518_p8, %p1512_p12 }
  0x29   : > { %1522 = shalt.err (!%p1519_p9)
}
  0x2a   : > { %1428 = dma.hbm_to_vmem [thread:$0]  (!%p1691_p13), %s1689_s7, 384, %s1696_s10, %s163_s11  }
  0x2b   : > { %p1965_p0 = scmp.lt.s32.totalorder %s1589_s18, 3  ;;  %p1966_p1 = scmp.ge.s32.totalorder %s1589_s18, 1 }
  0x2d   : > { %p180_p3 = pnand %p1966_p1, %p1965_p0 }
  0x2e   : > { %s1729_s6 = sand.u32 (!%p180_p3), 1, %s1581_s16  }
  0x2f   : > { %183 = sbr.rel (%p180_p3) target bundleno = 1408 (0x580), region = 36  ;;  %s186_s12 = scalar_lea.sflag (!%p180_p3), [#allocation5], %s1729_s6 }
  0x30   : > { %s1419_s9 = smul.u32 (!%p180_p3), 24, %s1729_s6 }
  0x32   : > { %s189_s8 = scalar_lea.vmem (!%p180_p3), [#allocation4], %s1419_s9 }
  0x36   : > { %1568 = dma.done.wait (%p1669_p6), %s186_s12, 384  }
  0x37   : > { %1570 = vsyncadd (%p1669_p6), %s186_s12, 4294966912  ;;  %vm216_vm0 = vcmask 154624   ;;  %vm218_vm1 = vcmask 703896   ;;  %v1592_v0 = vmov 0.0   ;;  %v1743_v1 = vld [vmem:[%s189_s8] sm:$0xff]  ;;  %v1745_v2 = vld [vmem:[%s189_s8 + $0x10] sm:$0xff] }
  0x38   : > { %217 = vst.msk [vmem:[#allocation2] sm:$0xff] %vm216_vm0, %v1592_v0  ;;  %1389 = vmatprep.subr.bf16.mxu1 %v1592_v0  ;;  %s1593_s7 = smov 19   ;;  %v1751_v3 = vld [vmem:[%s189_s8 + $0x8] sm:$0xff]  ;;  %vm237_vm2 = vcmask 1047704   ;;  %vm240_vm3 = vcmask 416768   ;;  %s1594_s25 = smov 127  }
  0x39   : > { %219 = vst.msk [vmem:[#allocation2 + $0x10] sm:$0xff] %vm218_vm1, %v1592_v0  ;;  %226 = vrot.lane.b32.xlu0 %v1743_v1, %s1593_s7  ;;  %230 = vrot.lane.b32.xlu1 %v1745_v2, %s1593_s7  ;;  %vm259_vm4 = vcmask 257024   ;;  %s1595_s10 = smov 126   ;;  %s1596_s11 = smov 110   ;;  %v1602_v13 = vmov 0   ;;  %vm1603_vm5 = vmmov 0  }
  0x3a   : > { %s1597_s13 = smov 109   ;;  %s1598_s14 = smov 108   ;;  %615 = vmatprep.mubr.bf16.mxu0 %v1602_v13  ;;  %1399 = vmatprep.mubr.msk.bf16.mxu1 %vm1603_vm5, %v1592_v0  ;;  %vm281_vm6 = vcmask 1043456   ;;  %vm283_vm7 = vcmask 1039360   ;;  %vm310_vm8 = vcmask 1031168   ;;  %vm337_vm9 = vcmask 900096  }
  0x3b   : > { %s1599_s20 = smov 92   ;;  %s1600_s22 = smov 91   ;;  %vm364_vm10 = vcmask 891904   ;;  %vm391_vm11 = vcmask 883712   ;;  %vm418_vm12 = vcmask 752640   ;;  %vm445_vm13 = vcmask 744448  }
  0x3c   : > { %s1601_s23 = smov 90   ;;  %vm472_vm14 = vcmask 736256   ;;  %vm569_vm15 = vcmask 588800   ;;  %vm684_vm1 = vcmask 261120   ;;  %p1967_p11 = scmp.ne.s32.totalorder %s1962_s26, 0 }
  0x3d   : > { %228 = vrot.lane.b32.xlu0 %v1751_v3, %s1593_s7 }
  0xab   : > { %v227_v4 = vpop.permute.xlu0 %226  ;;  %v231_v5 = vpop.permute.xlu1 %230 }
  0xac   : > { %238 = vst.msk [vmem:[#allocation2] sm:$0xff] %vm237_vm2, %v227_v4 }
  0xaf   : > { %v229_v6 = vpop.permute.xlu0 %228 }
  0xb0   : > { %v233_v7 = vsel %vm216_vm0, %v229_v6, %v231_v5  ;;  %v232_v9 = vsel %vm216_vm0, %v227_v4, %v229_v6 }
  0xb1   : > { %241 = vst.msk [vmem:[#allocation2 + $0x10] sm:$0xff] %vm240_vm3, %v233_v7 }
  0xb3   : > { %v242_v8 = vld [vmem:[#allocation2] sm:$0xff] }
  0xb4   : > { %v1341_v10 = vpack.c.bf16 %v232_v9, %v242_v8 }
  0xb6   : > { %275 = vrot.lane.b32.xlu1 %v1341_v10, %s1594_s25 }
  0xb8   : > { %v244_v11 = vld [vmem:[#allocation2 + $0x10] sm:$0xff] }
  0xb9   : > { %v1342_v12 = vpack.c.bf16 %v244_v11, %v244_v11 }
  0xba   : > { %303 = vrot.lane.b32.xlu1 %v1341_v10, %s1595_s10 }
  0xbb   : > { %277 = vrot.lane.b32.xlu0 %v1342_v12, %s1594_s25  ;;  %260 = vst.msk [vmem:[#allocation3 + $0x8] sm:$0xf] %vm259_vm4, %v1342_v12 }
  0xbe   : > { %330 = vrot.lane.b32.xlu1 %v1341_v10, %s1596_s11 }
  0xbf   : > { %305 = vrot.lane.b32.xlu0 %v1342_v12, %s1595_s10 }
  0xc2   : > { %357 = vrot.lane.b32.xlu1 %v1341_v10, %s1597_s13 }
  0xc3   : > { %332 = vrot.lane.b32.xlu0 %v1342_v12, %s1596_s11 }
  0xc6   : > { %384 = vrot.lane.b32.xlu1 %v1341_v10, %s1598_s14 }
  0xc7   : > { %359 = vrot.lane.b32.xlu0 %v1342_v12, %s1597_s13 }
  0xca   : > { %411 = vrot.lane.b32.xlu1 %v1341_v10, %s1599_s20 }
  0xcb   : > { %386 = vrot.lane.b32.xlu0 %v1342_v12, %s1598_s14 }
  0xce   : > { %438 = vrot.lane.b32.xlu1 %v1341_v10, %s1600_s22 }
  0xcf   : > { %413 = vrot.lane.b32.xlu0 %v1342_v12, %s1599_s20 }
  0xd2   : > { %465 = vrot.lane.b32.xlu1 %v1341_v10, %s1601_s23 }
  0xd3   : > { %440 = vrot.lane.b32.xlu0 %v1342_v12, %s1600_s22 }
  0xd7   : > { %467 = vrot.lane.b32.xlu0 %v1342_v12, %s1601_s23 }
 0x128   : > { %v276_v14 = vpop.permute.xlu1 %275 }
 0x129   : > { %v279_v18 = vrot.slane %v276_v14, 4 }
 0x12c   : > { %v304_v15 = vpop.permute.xlu1 %303 }
 0x12d   : > { %v278_v16 = vpop.permute.xlu0 %277  ;;  %v307_v26 = vrot.slane %v304_v15, 4 }
 0x12e   : > { %v280_v17 = vrot.slane %v278_v16, 4  ;;  %288 = vst.msk [vmem:[#allocation3 + $0x14] sm:$0xf] %vm259_vm4, %v278_v16 }
 0x130   : > { %v282_v19 = vsel %vm281_vm6, %v279_v18, %v280_v17  ;;  %v331_v20 = vpop.permute.xlu1 %330  ;;  %v478_v18 = vld [vmem:[%s1957_s2] sm:$0xf] }
 0x131   : > { %v284_v21 = vsel %vm283_vm7, %v276_v14, %v282_v19  ;;  %v306_v22 = vpop.permute.xlu0 %305  ;;  %v334_v32 = vrot.slane %v331_v20, 4 }
 0x132   : > { %v308_v23 = vrot.slane %v306_v22, 4  ;;  %315 = vst.msk [vmem:[#allocation3 + $0x20] sm:$0xf] %vm259_vm4, %v306_v22  ;;  %v1285_v24 = vcombine.high %v1341_v10, %v284_v21  ;;  %v1284_v25 = vcombine.low %v1341_v10, %v284_v21  ;;  %v665_v21 = vlaneseq }
 0x134   : > { %v358_v27 = vpop.permute.xlu1 %357  ;;  %583 = vmatprep.subr.bf16.mxu0 %v1285_v24  ;;  %v309_v30 = vsel %vm281_vm6, %v307_v26, %v308_v23  ;;  %v666_v22 = vshrl.u32 %v665_v21, 7  ;;  %v215_v24 = vld [vmem:[%s1956_s1] sm:$0x7] }
 0x135   : > { %v333_v28 = vpop.permute.xlu0 %332  ;;  %v1479_v29 = vld [vmem:[#allocation3 + $0x8] ss:$12 sps:$4 sm:$0xff]   ;;  %584 = vmatpush1.bf16.msra.mxu0 %v1284_v25  ;;  %v311_v35 = vsel %vm310_vm8, %v304_v15, %v309_v30  ;;  %v361_v41 = vrot.slane %v358_v27, 4 }
 0x136   : > { %v335_v31 = vrot.slane %v333_v28, 4  ;;  %342 = vst.msk [vmem:[#allocation3 + $0x2c] sm:$0xf] %vm259_vm4, %v333_v28  ;;  %1390 = vmatpush3.bf16.msra.mxu1 %v1479_v29  ;;  %v667_v23 = vsub.s32 0, %v666_v22  ;;  %v671_v25 = vsub.s32 1, %v666_v22  ;;  %v675_v26 = vsub.s32 2, %v666_v22 }
 0x137   : > { %1391 = vmatprep.subr.bf16.mxu1 %v1592_v0 }
 0x138   : > { %v336_v33 = vsel %vm281_vm6, %v334_v32, %v335_v31  ;;  %v385_v34 = vpop.permute.xlu1 %384  ;;  %v1824_v28 = vrot.slane %v215_v24, %v671_v25  ;;  %v1826_v29 = vrot.slane %v215_v24, %v675_v26 }
 0x139   : > { %v338_v36 = vsel %vm337_vm9, %v331_v20, %v336_v33  ;;  %v360_v37 = vpop.permute.xlu0 %359  ;;  %v388_v47 = vrot.slane %v385_v34, 4 }
 0x13a   : > { %v362_v38 = vrot.slane %v360_v37, 4  ;;  %369 = vst.msk [vmem:[#allocation3 + $0x38] sm:$0xf] %vm259_vm4, %v360_v37  ;;  %v1288_v39 = vcombine.high %v311_v35, %v338_v36  ;;  %v1287_v40 = vcombine.low %v311_v35, %v338_v36 }
 0x13c   : > { %v412_v42 = vpop.permute.xlu1 %411  ;;  %585 = vmatprep.subr.bf16.mxu0 %v1288_v39  ;;  %v363_v45 = vsel %vm281_vm6, %v361_v41, %v362_v38 }
 0x13d   : > { %v387_v43 = vpop.permute.xlu0 %386  ;;  %v1480_v44 = vld [vmem:[#allocation3 + $0x20] ss:$12 sps:$4 sm:$0xff]   ;;  %586 = vmatpush1.bf16.msra.mxu0 %v1287_v40  ;;  %v365_v49 = vsel %vm364_vm10, %v358_v27, %v363_v45  ;;  %v415_v56 = vrot.slane %v412_v42, 4  ;;  %v1822_v27 = vrot.slane %v215_v24, %v667_v23 }
 0x13e   : > { %v389_v46 = vrot.slane %v387_v43, 4  ;;  %396 = vst.msk [vmem:[#allocation3 + $0x44] sm:$0xf] %vm259_vm4, %v387_v43  ;;  %1392 = vmatpush3.bf16.msra.mxu1 %v1480_v44 }
 0x13f   : > { %1393 = vmatprep.subr.bf16.mxu1 %v1592_v0 }
 0x140   : > { %v390_v48 = vsel %vm281_vm6, %v388_v47, %v389_v46  ;;  %v439_v52 = vpop.permute.xlu1 %438 }
 0x141   : > { %v392_v50 = vsel %vm391_vm11, %v385_v34, %v390_v48  ;;  %v414_v51 = vpop.permute.xlu0 %413  ;;  %v442_v61 = vrot.slane %v439_v52, 4 }
 0x142   : > { %v416_v53 = vrot.slane %v414_v51, 4  ;;  %423 = vst.msk [vmem:[#allocation3 + $0x50] sm:$0xf] %vm259_vm4, %v414_v51  ;;  %v1291_v54 = vcombine.high %v365_v49, %v392_v50  ;;  %v1290_v55 = vcombine.low %v365_v49, %v392_v50 }
 0x144   : > { %587 = vmatprep.subr.bf16.mxu0 %v1291_v54  ;;  %v417_v59 = vsel %vm281_vm6, %v415_v56, %v416_v53  ;;  %v466_v62 = vpop.permute.xlu1 %465 }
 0x145   : > { %v441_v57 = vpop.permute.xlu0 %440  ;;  %v1481_v58 = vld [vmem:[#allocation3 + $0x38] ss:$12 sps:$4 sm:$0xff]   ;;  %588 = vmatpush1.bf16.msra.mxu0 %v1290_v55  ;;  %v419_v4 = vsel %vm418_vm12, %v412_v42, %v417_v59  ;;  %v469_v8 = vrot.slane %v466_v62, 4 }
 0x146   : > { %v443_v60 = vrot.slane %v441_v57, 4  ;;  %450 = vst.msk [vmem:[#allocation3 + $0x5c] sm:$0xf] %vm259_vm4, %v441_v57  ;;  %1394 = vmatpush3.bf16.msra.mxu1 %v1481_v58 }
 0x147   : > { %1395 = vmatprep.subr.bf16.mxu1 %v1592_v0 }
 0x148   : > { %v444_v63 = vsel %vm281_vm6, %v442_v61, %v443_v60 }
 0x149   : > { %v446_v5 = vsel %vm445_vm13, %v439_v52, %v444_v63  ;;  %v468_v6 = vpop.permute.xlu0 %467 }
 0x14a   : > { %v470_v7 = vrot.slane %v468_v6, 4  ;;  %477 = vst.msk [vmem:[#allocation3 + $0x68] sm:$0xf] %vm259_vm4, %v468_v6  ;;  %v1294_v9 = vcombine.high %v419_v4, %v446_v5  ;;  %v1293_v10 = vcombine.low %v419_v4, %v446_v5 }
 0x14c   : > { %v471_v11 = vsel %vm281_vm6, %v469_v8, %v470_v7  ;;  %589 = vmatprep.subr.bf16.mxu0 %v1294_v9 }
 0x14d   : > { %v473_v12 = vsel %vm472_vm14, %v466_v62, %v471_v11  ;;  %v1482_v14 = vld [vmem:[#allocation3 + $0x50] ss:$12 sps:$4 sm:$0xff]   ;;  %590 = vmatpush1.bf16.msra.mxu0 %v1293_v10 }
 0x14e   : > { %v1297_v15 = vcombine.high %v473_v12, %v473_v12  ;;  %v1296_v16 = vcombine.low %v473_v12, %v473_v12  ;;  %1396 = vmatpush3.bf16.msra.mxu1 %v1482_v14 }
 0x14f   : > { %1397 = vmatprep.subr.bf16.mxu1 %v1592_v0 }
 0x150   : > { %1299 = vmatprep.subr.msk.bf16.mxu0 %vm281_vm6, %v1297_v15  ;;  %v575_v17 = vsel %vm281_vm6, %v1296_v16, 0 }
 0x151   : > { %v1483_v19 = vld [vmem:[#allocation3 + $0x68] ss:$0 sps:$4 sm:$0xff]   ;;  %592 = vmatpush1.bf16.msra.mxu0 %v575_v17 }
 0x152   : > { %v581_v20 = vsel %vm281_vm6, %v1483_v19, 0 }
 0x153   : > { %1398 = vmatpush3.bf16.msra.mxu1 %v581_v20 }
 0x154   : > { %1300 = vmatmul.mubr.msk.bf16.vlgmr.msra.gmra.mrb[0].mxu0 %vm569_vm15, %v478_v18  ;;  %1403 = vmatprep.subr.bf16.mxu1 %v1592_v0 }
 0x155   : > { %1093 = vmatprep.mubr.bf16.mxu0 %v1602_v13 }
 0x156   : > { %1400 = vmatmul.mubr.msk.bf16.vlgmr.msra.gmra.mrb[0].mxu1 %vm569_vm15, %v478_v18 }
 0x157   : > { %1413 = vmatprep.mubr.msk.bf16.mxu1 %vm1603_vm5, %v1592_v0 }
 0x227   : > { %v617_v13 = vpop.f32.mrb[0].mxu0 }
 0x228   : > { %v680_v30 = vmul.f32 %v1822_v27, %v617_v13  ;;  %v619_v31 = vpop.f32.mrb[1].mxu0 }
 0x229   : > { %v681_v32 = vmul.f32 %v1824_v28, %v619_v31  ;;  %v621_v33 = vpop.f32.mrb[2].mxu0  ;;  %v658_v34 = vpop.f32.mrb[0].mxu1 }
 0x22a   : > { %v689_v35 = vmul.f32 %v680_v30, %v680_v30  ;;  %v622_v36 = vpop.f32.mrb[3].mxu0  ;;  %v682_v37 = vmul.f32 %v1826_v29, %v658_v34  ;;  %v1401_v38 = vpop.f32.mrb[1].mxu1 }
 0x22b   : > { %v690_v39 = vmul.f32 %v681_v32, %v681_v32  ;;  %v683_v40 = vadd.f32 %v681_v32, %v680_v30  ;;  %v661_v41 = vpop.f32.mrb[2].mxu1 }
 0x22c   : > { %v691_v42 = vmul.f32 %v682_v37, %v682_v37  ;;  %v1402_v43 = vpop.f32.mrb[3].mxu1  ;;  %v685_v44 = vsel %vm684_vm1, %v682_v37, 0.0 }
 0x22d   : > { %v692_v45 = vadd.f32 %v690_v39, %v689_v35  ;;  %v686_v46 = vadd.f32 %v685_v44, %v683_v40 }
 0x22e   : > { %v693_v47 = vsel %vm684_vm1, %v691_v42, 0.0 }
 0x22f   : > { %687 = vadd.xlane.f32.xlu1 %v686_v46  ;;  %v694_v48 = vadd.f32 %v693_v47, %v692_v45 }
 0x231   : > { %695 = vadd.xlane.f32.xlu0 %v694_v48 }
 0x2bc   : > { %v688_v49 = vpop.xlane.xlu1 %687 }
 0x2bd   : > { %v697_v50 = vmul.f32 0.00390625, %v688_v49 }
 0x2be   : > { %v696_v51 = vpop.xlane.xlu0 %695 }
 0x2bf   : > { %v698_v52 = vmul.f32 0.00390625, %v696_v51  ;;  %v699_v53 = vmul.f32 %v697_v50, %v697_v50  ;;  %v704_v56 = vsub.f32 %v619_v31, %v697_v50  ;;  %v703_v57 = vsub.f32 %v617_v13, %v697_v50 }
 0x2c0   : > { %v705_v58 = vsub.f32 %v658_v34, %v697_v50 }
 0x2c1   : > { %v700_v54 = vsub.f32 %v698_v52, %v699_v53 }
 0x2c3   : > { %v701_v55 = vadd.f32 1e-05, %v700_v54 }
 0x2c5   : > { %1489 = vrsqrt.f32 %v701_v55 }
 0x2cf   : > { %v1490_v59 = vpop.eup %1489 }
 0x2d0   : > { %v707_v60 = vmul.f32 %v1490_v59, %v704_v56  ;;  %v706_v61 = vmul.f32 %v1490_v59, %v703_v57  ;;  %v708_v62 = vmul.f32 %v1490_v59, %v705_v58 }
 0x2d2   : > { %v710_v63 = vmax.f32 %v707_v60, 0.0  ;;  %v709_v4 = vmax.f32 %v706_v61, 0.0  ;;  %v711_v7 = vmax.f32 %v708_v62, 0.0 }
 0x2d4   : > { %v713_v5 = vmul.f32 %v710_v63, %v1824_v28  ;;  %v712_v6 = vmul.f32 %v709_v4, %v1822_v27  ;;  %v714_v8 = vmul.f32 %v711_v7, %v1826_v29 }
 0x2d6   : > { %720 = vrot.lane.b32.xlu1 %v713_v5, %s1593_s7  ;;  %718 = vrot.lane.b32.xlu0 %v712_v6, %s1593_s7 }
 0x2da   : > { %722 = vrot.lane.b32.xlu1 %v714_v8, %s1593_s7  ;;  %s1420_s7 = smul.u32 384, %s1651_s19  ;;  %s1177_s19 = scalar_lea.sflag [#allocation6], %s1729_s6 }
 0x348   : > { %v721_v9 = vpop.permute.xlu1 %720  ;;  %v719_v10 = vpop.permute.xlu0 %718 }
 0x349   : > { %v724_v11 = vsel %vm216_vm0, %v719_v10, %v721_v9  ;;  %729 = vst.msk [vmem:[#allocation2] sm:$0xff] %vm237_vm2, %v719_v10 }
 0x34c   : > { %v723_v12 = vpop.permute.xlu1 %722 }
 0x34d   : > { %v725_v14 = vsel %vm216_vm0, %v721_v9, %v723_v12 }
 0x34e   : > { %731 = vst.msk [vmem:[#allocation2 + $0x10] sm:$0xff] %vm240_vm3, %v725_v14 }
 0x350   : > { %v750_v15 = vld [vmem:[#allocation2] sm:$0xff] }
 0x351   : > { %v1361_v16 = vpack.c.bf16 %v724_v11, %v750_v15 }
 0x353   : > { %764 = vrot.lane.b32.xlu0 %v1361_v16, %s1594_s25 }
 0x355   : > { %v752_v17 = vld [vmem:[#allocation2 + $0x10] sm:$0xff] }
 0x356   : > { %v1362_v18 = vpack.c.bf16 %v752_v17, %v752_v17 }
 0x357   : > { %790 = vrot.lane.b32.xlu0 %v1361_v16, %s1595_s10 }
 0x358   : > { %766 = vrot.lane.b32.xlu1 %v1362_v18, %s1594_s25  ;;  %749 = vst.msk [vmem:[#allocation3 + $0x8] sm:$0xf] %vm259_vm4, %v1362_v18  ;;  %s213_s25 = scalar_lea.vmem [#allocation7], %s1419_s9 }
 0x35b   : > { %816 = vrot.lane.b32.xlu0 %v1361_v16, %s1596_s11 }
 0x35c   : > { %792 = vrot.lane.b32.xlu1 %v1362_v18, %s1595_s10  ;;  %s1191_s10 = sshll.u32 %s213_s25, 4  ;;  %s1912_s10 = int_to_ptr.vmem [resolvable:$true] %s1191_s10 }
 0x35d   : > { %s1523_s9 = scalar_lea.vmem %s1912_s10, 384 }
 0x35e   : > { %p1524_p6 = scmp.ne.s32.totalorder %s1912_s10, %s1523_s9 }
 0x35f   : > { %842 = vrot.lane.b32.xlu0 %v1361_v16, %s1597_s13 }
 0x360   : > { %818 = vrot.lane.b32.xlu1 %v1362_v18, %s1596_s11  ;;  %p1525_p12 = pnand %p1524_p6, %p1967_p11 }
 0x362   : > { %p1526_p13 = pneg %p1525_p12 }
 0x363   : > { %868 = vrot.lane.b32.xlu0 %v1361_v16, %s1598_s14 }
 0x364   : > { %844 = vrot.lane.b32.xlu1 %v1362_v18, %s1597_s13 }
 0x367   : > { %894 = vrot.lane.b32.xlu0 %v1361_v16, %s1599_s20 }
 0x368   : > { %870 = vrot.lane.b32.xlu1 %v1362_v18, %s1598_s14  ;;  %s1910_s14 = scalar_lea.hbm %s1959_s4, %s1420_s7 }
 0x36b   : > { %920 = vrot.lane.b32.xlu0 %v1361_v16, %s1600_s22 }
 0x36c   : > { %896 = vrot.lane.b32.xlu1 %v1362_v18, %s1599_s20  ;;  %s1604_s20 = smov [#allocation7]  }
 0x36f   : > { %946 = vrot.lane.b32.xlu0 %v1361_v16, %s1601_s23 }
 0x370   : > { %922 = vrot.lane.b32.xlu1 %v1362_v18, %s1600_s22  ;;  %s1527_s22 = sshll.u32 %s1604_s20, 4  ;;  %s1528_s22 = int_to_ptr.vmem [resolvable:$false] %s1527_s22 }
 0x371   : > { %p1530_p5 = scmp.lt.s32.totalorder %s1912_s10, %s1528_s22 }
 0x374   : > { %948 = vrot.lane.b32.xlu1 %v1362_v18, %s1601_s23  ;;  %s1529_s23 = scalar_lea.vmem %s1528_s22, 768 }
 0x375   : > { %p1531_p10 = scmp.lt.s32.totalorder %s1529_s23, %s1523_s9 }
 0x377   : > { %p1532_p2 = por %p1531_p10, %p1530_p5 }
 0x379   : > { %p1533_p4 = pnand %p1532_p2, %p1526_p13 }
 0x3c5   : > { %v765_v19 = vpop.permute.xlu0 %764 }
 0x3c6   : > { %v768_v22 = vrot.slane %v765_v19, 4 }
 0x3c9   : > { %v791_v20 = vpop.permute.xlu0 %790 }
 0x3ca   : > { %v767_v21 = vpop.permute.xlu1 %766  ;;  %v794_v30 = vrot.slane %v791_v20, 4 }
 0x3cb   : > { %v769_v23 = vrot.slane %v767_v21, 4  ;;  %775 = vst.msk [vmem:[#allocation3 + $0x14] sm:$0xf] %vm259_vm4, %v767_v21 }
 0x3cd   : > { %v770_v24 = vsel %vm281_vm6, %v768_v22, %v769_v23  ;;  %v817_v25 = vpop.permute.xlu0 %816 }
 0x3ce   : > { %v771_v26 = vsel %vm283_vm7, %v765_v19, %v770_v24  ;;  %v793_v13 = vpop.permute.xlu1 %792  ;;  %v820_v39 = vrot.slane %v817_v25, 4 }
 0x3cf   : > { %v795_v31 = vrot.slane %v793_v13, 4  ;;  %801 = vst.msk [vmem:[#allocation3 + $0x20] sm:$0xf] %vm259_vm4, %v793_v13  ;;  %v1320_v32 = vcombine.low %v1361_v16, %v771_v26  ;;  %v1321_v33 = vcombine.high %v1361_v16, %v771_v26  ;;  %v958_v26 = vld [vmem:[%s1958_s3] sm:$0xf] }
 0x3d1   : > { %v796_v34 = vsel %vm281_vm6, %v794_v30, %v795_v31  ;;  %v843_v35 = vpop.permute.xlu0 %842  ;;  %1061 = vmatprep.subr.bf16.mxu0 %v1321_v33 }
 0x3d2   : > { %v797_v36 = vsel %vm310_vm8, %v791_v20, %v796_v34  ;;  %v819_v37 = vpop.permute.xlu1 %818  ;;  %v1484_v38 = vld [vmem:[#allocation3 + $0x8] ss:$12 sps:$4 sm:$0xff]   ;;  %1062 = vmatpush1.bf16.msra.mxu0 %v1320_v32  ;;  %v846_v45 = vrot.slane %v843_v35, 4 }
 0x3d3   : > { %v821_v40 = vrot.slane %v819_v37, 4  ;;  %827 = vst.msk [vmem:[#allocation3 + $0x2c] sm:$0xf] %vm259_vm4, %v819_v37  ;;  %1404 = vmatpush3.bf16.msra.mxu1 %v1484_v38 }
 0x3d4   : > { %1405 = vmatprep.subr.bf16.mxu1 %v1592_v0 }
 0x3d5   : > { %v822_v41 = vsel %vm281_vm6, %v820_v39, %v821_v40  ;;  %v869_v42 = vpop.permute.xlu0 %868 }
 0x3d6   : > { %v823_v43 = vsel %vm337_vm9, %v817_v25, %v822_v41  ;;  %v845_v44 = vpop.permute.xlu1 %844  ;;  %v872_v54 = vrot.slane %v869_v42, 4 }
 0x3d7   : > { %v847_v46 = vrot.slane %v845_v44, 4  ;;  %853 = vst.msk [vmem:[#allocation3 + $0x38] sm:$0xf] %vm259_vm4, %v845_v44  ;;  %v1323_v47 = vcombine.low %v797_v36, %v823_v43  ;;  %v1324_v48 = vcombine.high %v797_v36, %v823_v43 }
 0x3d9   : > { %v848_v49 = vsel %vm281_vm6, %v846_v45, %v847_v46  ;;  %v895_v50 = vpop.permute.xlu0 %894  ;;  %1063 = vmatprep.subr.bf16.mxu0 %v1324_v48 }
 0x3da   : > { %v849_v51 = vsel %vm364_vm10, %v843_v35, %v848_v49  ;;  %v871_v52 = vpop.permute.xlu1 %870  ;;  %v1485_v53 = vld [vmem:[#allocation3 + $0x20] ss:$12 sps:$4 sm:$0xff]   ;;  %1064 = vmatpush1.bf16.msra.mxu0 %v1323_v47  ;;  %v898_v60 = vrot.slane %v895_v50, 4 }
 0x3db   : > { %v873_v55 = vrot.slane %v871_v52, 4  ;;  %879 = vst.msk [vmem:[#allocation3 + $0x44] sm:$0xf] %vm259_vm4, %v871_v52  ;;  %1406 = vmatpush3.bf16.msra.mxu1 %v1485_v53 }
 0x3dc   : > { %1407 = vmatprep.subr.bf16.mxu1 %v1592_v0 }
 0x3dd   : > { %v874_v56 = vsel %vm281_vm6, %v872_v54, %v873_v55  ;;  %v921_v59 = vpop.permute.xlu0 %920 }
 0x3de   : > { %v875_v57 = vsel %vm391_vm11, %v869_v42, %v874_v56  ;;  %v897_v58 = vpop.permute.xlu1 %896  ;;  %v924_v8 = vrot.slane %v921_v59, 4 }
 0x3df   : > { %v899_v61 = vrot.slane %v897_v58, 4  ;;  %905 = vst.msk [vmem:[#allocation3 + $0x50] sm:$0xf] %vm259_vm4, %v897_v58  ;;  %v1326_v62 = vcombine.low %v849_v51, %v875_v57  ;;  %v1327_v63 = vcombine.high %v849_v51, %v875_v57 }
 0x3e1   : > { %v900_v4 = vsel %vm281_vm6, %v898_v60, %v899_v61  ;;  %1065 = vmatprep.subr.bf16.mxu0 %v1327_v63  ;;  %v947_v10 = vpop.permute.xlu0 %946 }
 0x3e2   : > { %v901_v5 = vsel %vm418_vm12, %v895_v50, %v900_v4  ;;  %v923_v6 = vpop.permute.xlu1 %922  ;;  %v1486_v7 = vld [vmem:[#allocation3 + $0x38] ss:$12 sps:$4 sm:$0xff]   ;;  %1066 = vmatpush1.bf16.msra.mxu0 %v1326_v62  ;;  %v950_v15 = vrot.slane %v947_v10, 4 }
 0x3e3   : > { %v925_v9 = vrot.slane %v923_v6, 4  ;;  %931 = vst.msk [vmem:[#allocation3 + $0x5c] sm:$0xf] %vm259_vm4, %v923_v6  ;;  %1408 = vmatpush3.bf16.msra.mxu1 %v1486_v7 }
 0x3e4   : > { %1409 = vmatprep.subr.bf16.mxu1 %v1592_v0 }
 0x3e5   : > { %v926_v11 = vsel %vm281_vm6, %v924_v8, %v925_v9 }
 0x3e6   : > { %v927_v12 = vsel %vm445_vm13, %v921_v59, %v926_v11  ;;  %v949_v14 = vpop.permute.xlu1 %948 }
 0x3e7   : > { %v951_v16 = vrot.slane %v949_v14, 4  ;;  %957 = vst.msk [vmem:[#allocation3 + $0x68] sm:$0xf] %vm259_vm4, %v949_v14  ;;  %v1329_v17 = vcombine.low %v901_v5, %v927_v12  ;;  %v1330_v18 = vcombine.high %v901_v5, %v927_v12 }
 0x3e9   : > { %v952_v19 = vsel %vm281_vm6, %v950_v15, %v951_v16  ;;  %1067 = vmatprep.subr.bf16.mxu0 %v1330_v18 }
 0x3ea   : > { %v953_v20 = vsel %vm472_vm14, %v947_v10, %v952_v19  ;;  %v1487_v21 = vld [vmem:[#allocation3 + $0x50] ss:$12 sps:$4 sm:$0xff]   ;;  %1068 = vmatpush1.bf16.msra.mxu0 %v1329_v17 }
 0x3eb   : > { %v1333_v22 = vcombine.high %v953_v20, %v953_v20  ;;  %v1332_v23 = vcombine.low %v953_v20, %v953_v20  ;;  %1410 = vmatpush3.bf16.msra.mxu1 %v1487_v21 }
 0x3ec   : > { %1411 = vmatprep.subr.bf16.mxu1 %v1592_v0 }
 0x3ed   : > { %1335 = vmatprep.subr.msk.bf16.mxu0 %vm281_vm6, %v1333_v22  ;;  %v1053_v24 = vsel %vm281_vm6, %v1332_v23, 0 }
 0x3ee   : > { %v1488_v25 = vld [vmem:[#allocation3 + $0x68] ss:$0 sps:$4 sm:$0xff]   ;;  %1070 = vmatpush1.bf16.msra.mxu0 %v1053_v24 }
 0x3ef   : > { %v1059_v13 = vsel %vm281_vm6, %v1488_v25, 0 }
 0x3f0   : > { %1412 = vmatpush3.bf16.msra.mxu1 %v1059_v13 }
 0x3f1   : > { %1336 = vmatmul.mubr.msk.bf16.vlgmr.msra.gmra.mrb[4].mxu0 %vm569_vm15, %v958_v26 }
 0x3f3   : > { %1414 = vmatmul.mubr.msk.bf16.vlgmr.msra.gmra.mrb[4].mxu1 %vm569_vm15, %v958_v26 }
 0x4c4   : > { %v1095_v30 = vpop.f32.mrb[4].mxu0 }
 0x4c5   : > { %v1142_v0 = vmul.f32 %v1095_v30, %v1822_v27  ;;  %v1097_v31 = vpop.f32.mrb[5].mxu0 }
 0x4c6   : > { %v1143_v32 = vmul.f32 %v1097_v31, %v1824_v28  ;;  %v1099_v33 = vpop.f32.mrb[6].mxu0  ;;  %v1136_v34 = vpop.f32.mrb[4].mxu1 }
 0x4c7   : > { %v1150_v35 = vmul.f32 %v1142_v0, %v1142_v0  ;;  %v1100_v36 = vpop.f32.mrb[7].mxu0  ;;  %v1144_v37 = vmul.f32 %v1136_v34, %v1826_v29  ;;  %v1415_v38 = vpop.f32.mrb[5].mxu1 }
 0x4c8   : > { %v1151_v39 = vmul.f32 %v1143_v32, %v1143_v32  ;;  %v1145_v40 = vadd.f32 %v1143_v32, %v1142_v0  ;;  %v1139_v41 = vpop.f32.mrb[6].mxu1 }
 0x4c9   : > { %v1152_v42 = vmul.f32 %v1144_v37, %v1144_v37  ;;  %v1416_v43 = vpop.f32.mrb[7].mxu1  ;;  %v1146_v44 = vsel %vm684_vm1, %v1144_v37, 0.0 }
 0x4ca   : > { %v1153_v45 = vadd.f32 %v1151_v39, %v1150_v35  ;;  %v1147_v46 = vadd.f32 %v1146_v44, %v1145_v40 }
 0x4cb   : > { %v1154_v27 = vsel %vm684_vm1, %v1152_v42, 0.0 }
 0x4cc   : > { %1148 = vadd.xlane.f32.xlu0 %v1147_v46  ;;  %v1155_v28 = vadd.f32 %v1154_v27, %v1153_v45 }
 0x4ce   : > { %1156 = vadd.xlane.f32.xlu1 %v1155_v28 }
 0x559   : > { %v1149_v47 = vpop.xlane.xlu0 %1148 }
 0x55a   : > { %v1158_v48 = vmul.f32 0.00390625, %v1149_v47 }
 0x55b   : > { %v1157_v29 = vpop.xlane.xlu1 %1156 }
 0x55c   : > { %v1159_v49 = vmul.f32 0.00390625, %v1157_v29  ;;  %v1160_v50 = vmul.f32 %v1158_v48, %v1158_v48  ;;  %v1164_v53 = vsub.f32 %v1095_v30, %v1158_v48  ;;  %v1165_v54 = vsub.f32 %v1097_v31, %v1158_v48 }
 0x55d   : > { %v1166_v55 = vsub.f32 %v1136_v34, %v1158_v48 }
 0x55e   : > { %v1161_v51 = vsub.f32 %v1159_v49, %v1160_v50 }
 0x560   : > { %v1162_v52 = vadd.f32 1e-05, %v1161_v51 }
 0x562   : > { %1491 = vrsqrt.f32 %v1162_v52 }
 0x56c   : > { %v1492_v56 = vpop.eup %1491 }
 0x56d   : > { %v1167_v57 = vmul.f32 %v1492_v56, %v1164_v53  ;;  %v1168_v58 = vmul.f32 %v1492_v56, %v1165_v54  ;;  %v1169_v59 = vmul.f32 %v1492_v56, %v1166_v55 }
 0x56f   : > { %v1170_v60 = vadd.f32 %v1167_v57, %v1743_v1  ;;  %v1171_v61 = vadd.f32 %v1168_v58, %v1751_v3  ;;  %v1172_v62 = vadd.f32 %v1169_v59, %v1745_v2 }
 0x571   : > { %1173 = vst [vmem:[%s213_s25] sm:$0xff] %v1170_v60  ;;  %1174 = vst [vmem:[%s213_s25 + $0x8] sm:$0xff] %v1171_v61 }
 0x572   : > { %1175 = vst.msk [vmem:[%s213_s25 + $0x10] sm:$0xff] %vm684_vm1, %v1172_v62 }
 0x573   : > { %1536 = shalt.err (!%p1533_p4)
}
 0x574   : > { %s1537_s6 = scalar_lea.hbm %s1910_s14, 384  ;;  %s1541_s30 = scalar_lea.hbm %s1959_s4, 768 }
 0x575   : > { %p1538_p7 = scmp.ne.s32.totalorder %s1910_s14, %s1537_s6  ;;  %p1542_p0 = scmp.lt.u32.totalorder %s1910_s14, %s1959_s4 }
 0x576   : > { %p1543_p1 = scmp.lt.u32.totalorder %s1541_s30, %s1537_s6  ;;  %p1545_p6 = scmp.lt.u32.totalorder %s1537_s6, %s1910_s14 }
 0x577   : > { %p1539_p8 = pnand %p1538_p7, %p1967_p11 }
 0x578   : > { %p1544_p3 = por %p1543_p1, %p1542_p0 }
 0x579   : > { %p1540_p9 = pneg %p1539_p8 }
 0x57a   : > { %p1546_p12 = por %p1545_p6, %p1544_p3 }
 0x57c   : > { %p1547_p13 = pnand %p1546_p12, %p1540_p9 }
 0x57e   : > { %1550 = shalt.err (!%p1547_p13)
}
 0x57f   : > { %1423 = dma.vmem_to_hbm [thread:$0]  (%p1967_p11), %s1912_s10, 384, %s1910_s14, %s1177_s19  }
 0x580 PF: > { %s1203_s8 = sand.u32 1, %s1577_s15   ;;  %p1968_p5 = scmp.ne.s32.totalorder %s1963_s27, 0 }
 0x581   : > { %p1969_p10 = scmp.ge.s32.totalorder %s1589_s18, 2  ;;  %s1204_s7 = scalar_lea.sflag [#allocation6], %s1203_s8 }
 0x583   : > { %p1430_p2 = pnand %p1969_p10, %p1968_p5 }
 0x585   : > { %1572 = dma.done.wait (!%p1430_p2), %s1204_s7, 384  }
 0x586   : > { %1574 = vsyncadd (!%p1430_p2), %s1204_s7, 4294966912  ;;  %p17_p4 = scmp.ge.s32.totalorder %s1655_s21, 4   ;;  %s1970_s15 = smov %s1581_s16 }
 0x587   : > { %s1971_s16 = smov %s1585_s17  ;;  %s1972_s17 = smov %s1667_s24 }
 0x588   : > { %s1973_s18 = smov %s1655_s21  ;;  %19 = sbr.rel (!%p17_p4) target bundleno = 5 (0x5), region = 81 }
 0x58f   :  { %1209 = vsyncpa [#allocation5], 1 }
 0x590   :  { %1211 = vsyncpa [#allocation5 + $0x1], 1 }
 0x591   :  { %1212 = vsyncpa [#allocation6], 1 }
 0x592   :  { %1214 = vsyncpa [#allocation6 + $0x1], 1 }

</bundles_post_ra>
